<compile_context>
chip_gen: v5e
topology: v5e:2x2
jax: 0.10.0
libtpu: 0.0.40
codegen_flags: <defaults>
</compile_context>

<pallas_src>
import jax
import jax.numpy as jnp
from jax.experimental import pallas as pl
from jax.experimental.pallas import tpu as pltpu


def _prompt_kernel(ctx_ref, w1_ref, w2_ref, o_ref, h_ref):
    # ctx_ref: [B, E]          (same block every grid step)
    # w1_ref : [1, E, H]       (layer l's first Linear weight, transposed)
    # w2_ref : [1, 1, H, TN]   (layer l, column-tile j of second Linear weight)
    # o_ref  : [1, B, TN]
    # h_ref  : [B, H] f32 scratch, persists across the column (j) axis.
    j = pl.program_id(1)

    @pl.when(j == 0)
    def _():
        # Recompute h at the start of every layer (j resets to 0 per l).
        x = ctx_ref[...].astype(w1_ref.dtype)
        h = jnp.dot(x, w1_ref[0], preferred_element_type=jnp.float32)
        h_ref[...] = jnp.maximum(h, 0.0)                # ReLU in f32

    h = h_ref[...].astype(w2_ref.dtype)                 # bf16 for MXU
    out = jnp.dot(h, w2_ref[0, 0], preferred_element_type=jnp.float32)
    o_ref[0] = out.astype(o_ref.dtype)


def _pick_tn(out_cols, tn_target):
    """Largest multiple of 128 that divides out_cols and is <= tn_target."""
    if out_cols % 128 != 0:
        return out_cols                                 # fall back: full dim
    tn = min(tn_target, out_cols)
    tn -= tn % 128
    while tn >= 128:
        if out_cols % tn == 0:
            return tn
        tn -= 128
    return out_cols


def continuous_prompt_forward(context, w1_stack, w2_stack, length,
                              tn_target=1024, weight_dtype=jnp.bfloat16):
    """context: [B, E], w1_stack: [L, E, H], w2_stack: [L, H, length*E]
    returns: [L, B, length, E]  (matches torch output after permute(1,0,2,3))."""
    B, E = context.shape
    L, _, H = w1_stack.shape
    out_cols = w2_stack.shape[-1]
    assert out_cols == length * E

    # Column tiling of the big (bandwidth-dominant) W2 matmul.
    TN = _pick_tn(out_cols, tn_target)
    NJ = out_cols // TN

    # Stream weights in bf16 (f32 accumulation inside the kernel).
    w1 = w1_stack.astype(weight_dtype)
    # Pre-reshape W2 so each (l, j) tile [H, TN] is contiguous in HBM.
    w2 = w2_stack.astype(weight_dtype).reshape(L, H, NJ, TN).transpose(0, 2, 1, 3)

    itemsize = lambda dt: jnp.dtype(dt).itemsize
    buf_bytes = (
        2 * (B * E * itemsize(context.dtype)            # ctx (double-buffered)
             + E * H * itemsize(weight_dtype)           # W1 tile
             + H * TN * itemsize(weight_dtype)          # W2 tile
             + B * TN * itemsize(context.dtype))        # output tile
        + B * H * 4                                     # h scratch (f32)
    )
    vmem_limit = int(min(max(2 * buf_bytes, 8 << 20), 64 << 20))

    out = pl.pallas_call(
        _prompt_kernel,
        out_shape=jax.ShapeDtypeStruct((L, B, out_cols), context.dtype),
        grid_spec=pltpu.PrefetchScalarGridSpec(
            num_scalar_prefetch=0,
            grid=(L, NJ),
            in_specs=[
                pl.BlockSpec((B, E), lambda l, j: (0, 0)),
                pl.BlockSpec((1, E, H), lambda l, j: (l, 0, 0)),
                pl.BlockSpec((1, 1, H, TN), lambda l, j: (l, j, 0, 0)),
            ],
            out_specs=pl.BlockSpec((1, B, TN), lambda l, j: (l, 0, j)),
            scratch_shapes=[pltpu.VMEM((B, H), jnp.float32)],
        ),
        compiler_params=pltpu.CompilerParams(
            # Column axis shares the h scratch -> must be "arbitrary";
            # layer axis has no cross-iteration dependency -> megacore parallel.
            dimension_semantics=("parallel", "arbitrary"),
            vmem_limit_bytes=vmem_limit,
        ),
    )(context, w1, w2)

    # out.reshape(bsz, len, out_features) per layer, stacked & permuted already.
    return out.reshape(L, B, length, E)


def reference_forward(context, w1_stack, w2_stack, length,
                      weight_dtype=jnp.bfloat16):
    # Pure-JAX reference mirroring the PyTorch module (and the kernel's
    # bf16-weight / f32-accumulation precision path).
    L = w1_stack.shape[0]
    B, E = context.shape
    x = context.astype(weight_dtype)
    w1 = w1_stack.astype(weight_dtype)
    w2 = w2_stack.astype(weight_dtype)
    outs = []
    for l in range(L):
        h = jnp.maximum(
            jnp.dot(x, w1[l], preferred_element_type=jnp.float32), 0.0)
        o = jnp.dot(h.astype(weight_dtype), w2[l],
                    preferred_element_type=jnp.float32)
        o = o.astype(context.dtype).reshape(B, length, E)
        outs.append(o[:, None])                          # unsqueeze(1)
    stacked = jnp.concatenate(outs, axis=1)              # [B, L, len, E]
    return jnp.transpose(stacked, (1, 0, 2, 3))          # permute(1,0,2,3)


if __name__ == "__main__":
    # Small shapes consistent with the module (scaled down from 768/48/12),
    # chosen so out_cols = length*E = 512 splits into NJ=2 column tiles.
    num_layers = 4
    embed_dim = 128     # E  (in_features == out_features == embed_dim)
    hidden_dim = 16     # H
    length = 4          # prompt length
    batch = 2

    key = jax.random.PRNGKey(0)
    k_ctx, k_w1, k_w2 = jax.random.split(key, 3)

    context = jax.random.normal(k_ctx, (batch, embed_dim), dtype=jnp.float32)

    # nn.Linear(in, out, bias=False) weight is [out, in]; we store the transpose
    # ([in, out]) so the kernel does x @ W directly. use_bias=False (default).
    w1_stack = 0.1 * jax.random.normal(
        k_w1, (num_layers, embed_dim, hidden_dim), dtype=jnp.float32)
    w2_stack = 0.1 * jax.random.normal(
        k_w2, (num_layers, hidden_dim, length * embed_dim), dtype=jnp.float32)

    # TODO(synk): dropout forward-hook (p>0) and sigmoid/softmax activation
    # variants are not implemented; module defaults (relu, dropout=0.0) are.
    out = continuous_prompt_forward(context, w1_stack, w2_stack, length,
                                    tn_target=256)       # exercises NJ=2 tiling
    out = jax.block_until_ready(out)

    ref = reference_forward(context, w1_stack, w2_stack, length)
    assert out.shape == (num_layers, batch, length, embed_dim), out.shape
    assert jnp.allclose(out, ref, atol=1e-3, rtol=1e-3), "mismatch vs reference"

    print("KERNEL_OK")
</pallas_src>

<mosaic_0001>
module attributes {stable_mosaic.version = 11 : i64} {
  func.func @_prompt_kernel(%arg0: i32, %arg1: i32, %arg2: memref<2x128xf32, #tpu.memory_space<vmem>>, %arg3: memref<1x128x16xbf16, #tpu.memory_space<vmem>>, %arg4: memref<1x1x16x256xbf16, #tpu.memory_space<vmem>>, %arg5: memref<1x2x256xf32, #tpu.memory_space<vmem>>, %arg6: memref<2x16xf32, #tpu.memory_space<vmem>>) attributes {dimension_semantics = [#tpu.dimension_semantics<parallel>, #tpu.dimension_semantics<arbitrary>], iteration_bounds = array<i64: 4, 2>, scalar_prefetch = 0 : i64, scratch_operands = 1 : i64, tpu.core_type = #tpu.core_type<tc>, window_params = [{pipeline_mode = #tpu.pipeline_mode<synchronous>, transform_indices = @transform_0, window_bounds = array<i64: 2, 128>}, {transform_indices = @transform_1, window_bounds = array<i64: 1, 128, 16>}, {transform_indices = @transform_2, window_bounds = array<i64: 1, 1, 16, 256>}, {transform_indices = @transform_3, window_bounds = array<i64: 1, 2, 256>}]} {
    %c0_i32 = arith.constant 0 : i32
    %0 = arith.cmpi eq, %arg1, %c0_i32 : i32
    %1 = arith.extui %0 : i1 to i32
    %c0_i32_0 = arith.constant 0 : i32
    %2 = arith.cmpi ne, %1, %c0_i32_0 : i32
    scf.if %2 {
      %c0_9 = arith.constant 0 : index
      %c0_10 = arith.constant 0 : index
      %11 = vector.load %arg2[%c0_9, %c0_10] : memref<2x128xf32, #tpu.memory_space<vmem>>, vector<2x128xf32>
      %12 = arith.truncf %11 : vector<2x128xf32> to vector<2x128xbf16>
      %c0_11 = arith.constant 0 : index
      %c0_12 = arith.constant 0 : index
      %c0_13 = arith.constant 0 : index
      %13 = vector.load %arg3[%c0_11, %c0_12, %c0_13] : memref<1x128x16xbf16, #tpu.memory_space<vmem>>, vector<1x128x16xbf16>
      %14 = vector.shape_cast %13 : vector<1x128x16xbf16> to vector<128x16xbf16>
      %cst_14 = arith.constant dense<0.000000e+00> : vector<2x16xf32>
      %15 = tpu.matmul %12, %14, %cst_14 {dimension_numbers = #tpu.dot_dimension_numbers<[1], [0], [0], [1], [0, 0, 1, 1], [], []>} : vector<2x128xbf16>, vector<128x16xbf16>, vector<2x16xf32> -> vector<2x16xf32>
      %cst_15 = arith.constant 0.000000e+00 : f32
      %16 = vector.broadcast %cst_15 : f32 to vector<2x16xf32>
      %17 = arith.maximumf %15, %16 : vector<2x16xf32>
      %c0_16 = arith.constant 0 : index
      %c0_17 = arith.constant 0 : index
      %18 = vector.load %arg6[%c0_16, %c0_17] : memref<2x16xf32, #tpu.memory_space<vmem>>, vector<2x16xf32>
      tpu.vector_store %arg6[%c0_16, %c0_17], %17 {strides = array<i32>} : memref<2x16xf32, #tpu.memory_space<vmem>>, vector<2x16xf32>,
    } else {
    }
    %c0 = arith.constant 0 : index
    %c0_1 = arith.constant 0 : index
    %3 = vector.load %arg6[%c0, %c0_1] : memref<2x16xf32, #tpu.memory_space<vmem>>, vector<2x16xf32>
    %4 = arith.truncf %3 : vector<2x16xf32> to vector<2x16xbf16>
    %c0_2 = arith.constant 0 : index
    %c0_3 = arith.constant 0 : index
    %c0_4 = arith.constant 0 : index
    %c0_5 = arith.constant 0 : index
    %5 = vector.load %arg4[%c0_2, %c0_3, %c0_4, %c0_5] : memref<1x1x16x256xbf16, #tpu.memory_space<vmem>>, vector<1x1x16x256xbf16>
    %6 = vector.shape_cast %5 : vector<1x1x16x256xbf16> to vector<16x256xbf16>
    %cst = arith.constant dense<0.000000e+00> : vector<2x256xf32>
    %7 = tpu.matmul %4, %6, %cst {dimension_numbers = #tpu.dot_dimension_numbers<[1], [0], [0], [1], [0, 0, 1, 1], [], []>} : vector<2x16xbf16>, vector<16x256xbf16>, vector<2x256xf32> -> vector<2x256xf32>
    %c0_6 = arith.constant 0 : index
    %c0_7 = arith.constant 0 : index
    %c0_8 = arith.constant 0 : index
    %8 = vector.load %arg5[%c0_6, %c0_7, %c0_8] : memref<1x2x256xf32, #tpu.memory_space<vmem>>, vector<1x2x256xf32>
    %9 = vector.shape_cast %8 : vector<1x2x256xf32> to vector<2x256xf32>
    %10 = vector.shape_cast %7 : vector<2x256xf32> to vector<1x2x256xf32>
    tpu.vector_store %arg5[%c0_6, %c0_7, %c0_8], %10 {strides = array<i32>} : memref<1x2x256xf32, #tpu.memory_space<vmem>>, vector<1x2x256xf32>,
    return
  }
  func.func @transform_0(%arg0: i32, %arg1: i32) -> (i32, i32) {
    %c0_i32 = arith.constant 0 : i32
    %c0_i32_0 = arith.constant 0 : i32
    %c0_i32_1 = arith.constant 0 : i32
    return %c0_i32, %c0_i32_0 : i32, i32
  }
  func.func @transform_1(%arg0: i32, %arg1: i32) -> (i32, i32, i32) {
    %c0_i32 = arith.constant 0 : i32
    %c0_i32_0 = arith.constant 0 : i32
    %c0_i32_1 = arith.constant 0 : i32
    return %arg0, %c0_i32, %c0_i32_0 : i32, i32, i32
  }
  func.func @transform_2(%arg0: i32, %arg1: i32) -> (i32, i32, i32, i32) {
    %c0_i32 = arith.constant 0 : i32
    %c0_i32_0 = arith.constant 0 : i32
    %c0_i32_1 = arith.constant 0 : i32
    return %arg0, %arg1, %c0_i32, %c0_i32_0 : i32, i32, i32, i32
  }
  func.func @transform_3(%arg0: i32, %arg1: i32) -> (i32, i32, i32) {
    %c0_i32 = arith.constant 0 : i32
    %c0_i32_0 = arith.constant 0 : i32
    return %arg0, %c0_i32, %arg1 : i32, i32, i32
  }
}

</mosaic_0001>

<bundles_post_ra>
// kernel: tpu_custom_call.1
= control target key start
LH: loop header
LB: loop body
LE: loop exit
PB: predicated region body
PF: predicated region fallthrough
CT: control target
= control target key end

     0   :  { %8 = vsyncpa [#allocation4], 0  ;;  %s873_s0 = inlined_call_operand.vmem [shape: f32[2,128], index: 0, kind: input, shape index: {}]   ;;  %s874_s1 = inlined_call_operand.vmem [shape: bf16[4,128,16], index: 1, kind: input, shape index: {}]   ;;  %s875_s2 = inlined_call_operand.vmem [shape: bf16[4,2,16,256], index: 2, kind: input, shape index: {}]   ;;  %s876_s3 = inlined_call_operand.hbm [shape: f32[4,2,512], index: 3, kind: output, shape index: {}]  }
   0x1   :  { %10 = vsyncpa [#allocation4 + $0x1], 0  ;;  %s727_s12 = smov 0   ;;  %s729_s13 = smov 0  }
   0x2   :  { %s731_s14 = smov 0   ;;  %s733_s15 = smov 0  }
   0x3   :  { %s735_s16 = smov 0   ;;  %s737_s17 = smov 0  }
   0x4   :  { %s739_s18 = smov 0   ;;  %s741_s19 = smov 0  }
   0x5 LB: > { %s469_s20 = sadd.s32 4294967295, %s705_s19   ;;  %s470_s21 = sadd.s32 4294967294, %s705_s19   ;;  %s705_s19 = sphi %s741_s19, %s16_s19   ;;  %s701_s18 = sphi %s739_s18, %s890_s18   ;;  %s697_s17 = sphi %s737_s17, %s889_s17   ;;  %s693_s16 = sphi %s735_s16, %s888_s16   ;;  %s689_s15 = sphi %s733_s15, %s887_s15   ;;  %s685_s14 = sphi %s731_s14, %s886_s14   ;;  %s681_s13 = sphi %s729_s13, %s885_s13   ;;  %s677_s12 = sphi %s727_s12, %s884_s12  }
   0x6   : > { %s25_s22 = sadd.s32 1, %s697_s17  ;;  %s28_s23 = sadd.s32 1, %s701_s18 }
   0x7   : > { %p26_p0 = scmp.ge.s32.totalorder %s25_s22, 2  ;;  %p122_p1 = scmp.ne.s32.totalorder %s685_s14, %s681_s13 }
   0x8   : > { %p123_p2 = scmp.eq.s32.totalorder %s469_s20, 7  ;;  %p128_p5 = scmp.ne.s32.totalorder %s681_s13, %s677_s12 }
   0x9   : > { %s892_s22 = smov (%p26_p0, %s25_s22), 0  ;;  %s894_s23 = smov (!%p26_p0, %s28_s23), %s701_s18 }
   0xa   : > { %s108_s24 = ssub.s32 %s697_s17, %s892_s22  ;;  %p778_p3 = por %p123_p2, %p122_p1 }
   0xb   : > { %p30_p4 = scmp.ge.s32.totalorder %s894_s23, 4  ;;  %p129_p6 = scmp.eq.s32.totalorder %s470_s21, 7 }
   0xc   : > { %p473_p7 = scmp.ge.s32.totalorder %s705_s19, 1  ;;  %p170_p9 = scmp.lt.s32.totalorder %s705_s19, 9 }
   0xd   : > { %s896_s23 = smov (%p30_p4, %s894_s23), 0  ;;  %p787_p8 = por %p129_p6, %p128_p5 }
   0xe   : > { %880 = sst [smem:[#allocation6_spill]] %s896_s23  ;;  %s107_s27 = ssub.s32 %s701_s18, %s896_s23 }
   0xf   : > { %s112_s28 = sadd.s32 1, %s685_s14  ;;  %s109_s29 = sor.u32 %s108_s24, %s107_s27 }
  0x10   : > { %p171_p10 = pnand %p473_p7, %p170_p9  ;;  %p110_p11 = scmp.eq.s32.totalorder %s109_s29, 0 }
  0x11   : > { %s878_s4 = sand.u32 (!%p171_p10), 1, %s681_s13   ;;  %p203_p12 = scmp.lt.s32.totalorder (!%p171_p10), %s693_s16, 3 }
  0x12   : > { %s796_s30 = scalar_select %p110_p11, %s685_s14, %s112_s28  }
  0x13   : > { %174 = sbr.rel (%p171_p10) target bundleno = 340 (0x154), region = 32  ;;  %s802_s5 = sshll.u32 (!%p171_p10), %s878_s4, 2 }
  0x14   : > { %p210_p13 = scmp.lt.s32.totalorder (!%p171_p10), %s689_s15, 1  ;;  %s202_s4 = scalar_lea.vmem (!%p171_p10), [#allocation3], %s802_s5 }
  0x15   : > { %p480_p0 = scmp.ne.s32.totalorder (!%p171_p10), %s689_s15, 0 }
  0x18   : > { %s204_s6 = scalar_select %p203_p12, %s693_s16, 3 }
  0x19   : > { %s211_s7 = scalar_select %p210_p13, %s689_s15, 1 }
  0x1a   : > { %s529_s8 = sshll.u32 %s204_s6, 6  ;;  %s478_s9 = sshll.u32 %s204_s6, 3 }
  0x1b   : > { %s207_s20 = scalar_lea.vmem %s874_s1, %s529_s8  ;;  %s477_s21 = sshll.u32 %s211_s7, 2 }
  0x1c   : > { %s214_s24 = sadd.s32 %s478_s9, %s477_s21  ;;  %222 = sbr.rel (%p480_p0) target bundleno = 199 (0xc7), region = 36 }
  0x1d   : > { %s479_s27 = sshll.u32 %s214_s24, 2 }
  0x1e   : > { %s813_s23 = scalar_lea.vmem %s875_s2, %s479_s27 }
  0x21   : > { %v537_v0 = vld [vmem:[%s207_s20 + $0x38] sm:$0xff]  ;;  %v536_v1 = vld [vmem:[%s207_s20 + $0x30] sm:$0xff]  ;;  %v535_v2 = vld [vmem:[%s207_s20 + $0x28] sm:$0xff]  ;;  %vm303_vm0 = vcmask 123904  }
  0x22   : > { %289 = vmatpush.bf16.msra.mxu0 %v537_v0  ;;  %v534_v3 = vld [vmem:[%s207_s20 + $0x20] sm:$0xff]  ;;  %v533_v4 = vld [vmem:[%s207_s20 + $0x18] sm:$0xff]  ;;  %v532_v5 = vld [vmem:[%s207_s20 + $0x10] sm:$0xff] }
  0x23   : > { %v531_v6 = vld [vmem:[%s207_s20 + $0x8] sm:$0xff]  ;;  %v530_v7 = vld [vmem:[%s207_s20] sm:$0xff] }
  0x24   : > { %v223_v8 = vld [vmem:[%s873_s0] sm:$0x3] }
  0x25   : > { %v224_v9 = vpack.c.bf16 %v223_v8, %v223_v8 }
  0x26   : > { %290 = vmatpush.bf16.msra.mxu0 %v536_v1 }
  0x2a   : > { %291 = vmatpush.bf16.msra.mxu0 %v535_v2 }
  0x2e   : > { %292 = vmatpush.bf16.msra.mxu0 %v534_v3 }
  0x32   : > { %293 = vmatpush.bf16.msra.mxu0 %v533_v4 }
  0x36   : > { %294 = vmatpush.bf16.msra.mxu0 %v532_v5 }
  0x3a   : > { %295 = vmatpush.bf16.msra.mxu0 %v531_v6 }
  0x3e   : > { %296 = vmatpush.bf16.msra.mxu0 %v530_v7 }
  0x41   : > { %297 = vmatmul.bf16.vlgmr.msra.gmra.mxu0 %v224_v9 }
  0xbe   : > { %v298_v10 = vpop.f32.mrf.mxu0 }
  0xbf   : > { %v302_v11 = vmax.f32 %v298_v10, 0.0 }
  0xc1   : > { %304 = vst.msk [vmem:[#allocation2] sm:$0x3] %vm303_vm0, %v302_v11 }
  0xc6   : > { %v300_v12 = vpop.f32.mrf.mxu0 }
  0xc7 PF: > { %v515_v13 = vld [vmem:[%s813_s23] sm:$0xf]  ;;  %v539_v14 = vld [vmem:[%s813_s23 + $0x4] sm:$0xf0]  ;;  %v538_v15 = vld [vmem:[%s813_s23 + $0x4] sm:$0xf] }
  0xc8   : > { %v516_v16 = vor.u32 %v539_v14, %v515_v13  ;;  %v517_v17 = vld [vmem:[%s813_s23 + $0x8] sm:$0xf0]  ;;  %v305_v18 = vld [vmem:[#allocation2] sm:$0x3]  ;;  %vm319_vm1 = vcmask 130048   ;;  %s524_s8 = sshll.u32 %s689_s15, 1 }
  0xc9   : > { %v520_v19 = vor.u32 %v538_v15, %v517_v17  ;;  %v306_v20 = vpack.c.bf16 %v305_v18, %v305_v18  ;;  %s525_s9 = sshll.u32 %s693_s16, 2  ;;  %s372_s23 = sshll.u32 %s202_s4, 4  ;;  %vm352_vm2 = vcmask 1041408   ;;  %s373_s23 = int_to_ptr.vmem [resolvable:$true] %s372_s23 }
  0xca   : > { %330 = vmatpush.bf16.msra.mxu0 %v516_v16  ;;  %s368_s10 = sadd.s32 %s525_s9, %s524_s8  ;;  %s882_s15 = sand.u32 1, %s681_s13  }
  0xcb   : > { %343 = vmatpush.bf16.msra.mxu1 %v520_v19  ;;  %s526_s11 = sshll.u32 %s368_s10, 1  ;;  %s357_s16 = scalar_lea.sflag [#allocation4], %s882_s15 }
  0xcc   : > { %s370_s24 = scalar_lea.hbm %s876_s3, %s526_s11  ;;  %s631_s8 = scalar_lea.hbm %s876_s3, 32 }
  0xcd   : > { %521 = vmatmul.msk.bf16.vlgmr.msra.gmra.mxu0 %vm319_vm1, %v306_v20  ;;  %s374_s27 = sshll.u32 %s370_s24, 4  ;;  %s375_s27 = int_to_ptr.hbm [resolvable:$true] %s374_s27 }
  0xce   : > { %522 = vmatmul.msk.bf16.vlgmr.msra.gmra.mxu1 %vm319_vm1, %v306_v20  ;;  %s625_s28 = sshra.s32 %s375_s27, 4  ;;  %s626_s28 = int_to_ptr.hbm [resolvable:$true] %s625_s28 }
  0xcf   : > { %s627_s29 = scalar_lea.hbm %s626_s28, 4  ;;  %p632_p5 = scmp.lt.s32.totalorder %s626_s28, %s876_s3 }
  0xd0   : > { %p628_p1 = scmp.ne.s32.totalorder %s626_s28, %s627_s29  ;;  %p633_p6 = scmp.lt.s32.totalorder %s631_s8, %s627_s29 }
  0xd2   : > { %p629_p2 = pnand %p628_p1, %p778_p3  ;;  %p634_p7 = por %p633_p6, %p632_p5 }
  0xd4   : > { %p630_p4 = pneg %p629_p2 }
  0xd6   : > { %p635_p9 = pnand %p634_p7, %p630_p4 }
 0x14a   : > { %v332_v21 = vpop.f32.mrf.mxu0 }
 0x14b   : > { %v345_v22 = vpop.f32.mrf.mxu1 }
 0x14c   : > { %v351_v23 = vrot.slane %v345_v22, 6 }
 0x14e   : > { %v353_v24 = vsel %vm352_vm2, %v332_v21, %v351_v23 }
 0x14f   : > { %355 = vst [vmem:[%s202_s4] sm:$0xf] %v353_v24 }
 0x150   : > { %638 = shalt.err (!%p635_p9)
}
 0x151   : > { %540 = dma.vmem_to_hbm [thread:$0]  (%p778_p3), %s373_s23, 64, %s375_s27, %s357_s16  }
 0x152   : > { %v334_v25 = vpop.f32.mrf.mxu0 }
 0x153   : > { %v347_v26 = vpop.f32.mrf.mxu1 }
 0x154 PF: > { %p546_p10 = scmp.ge.s32.totalorder %s705_s19, 2  ;;  %s386_s4 = sand.u32 1, %s677_s12  }
 0x155   : > { %s387_s5 = scalar_lea.sflag [#allocation4], %s386_s4 }
 0x156   : > { %p543_p11 = pnand %p546_p10, %p787_p8 }
 0x158   : > { %p544_p12 = pneg %p543_p11 }
 0x15a   : > { %672 = dma.done.wait (%p544_p12), %s387_s5, 64  }
 0x15b   : > { %674 = vsyncadd (%p544_p12), %s387_s5, 4294967232  ;;  %s16_s19 = sadd.s32 1, %s705_s19   ;;  %s883_s25 = sld [smem:[#allocation6_spill]] }
 0x15c   : > { %p13_p13 = scmp.ge.s32.totalorder %s16_s19, 10   ;;  %s884_s12 = smov %s681_s13 }
 0x15d   : > { %s885_s13 = smov %s685_s14  ;;  %s886_s14 = smov %s796_s30 }
 0x15e   : > { %s887_s15 = smov %s697_s17  ;;  %s888_s16 = smov %s701_s18 }
 0x15f   : > { %s889_s17 = smov %s892_s22  ;;  %15 = sbr.rel (!%p13_p13) target bundleno = 5 (0x5), region = 74 }
 0x161   : > { %s890_s18 = smov %s883_s25 }
 0x164   :  { %393 = vsyncpa [#allocation4], 1 }
 0x165   :  { %395 = vsyncpa [#allocation4 + $0x1], 1 }

</bundles_post_ra>
